<compile_context>
chip_gen: v7x
topology: tpu7x:2x2x1
jax: 0.10.0
libtpu: 0.0.40
codegen_flags: <defaults>
</compile_context>

<pallas_src>
import numpy as np

import jax
import jax.numpy as jnp
from jax.experimental import pallas as pl
from jax.experimental.pallas import tpu as pltpu


# ----------------------------- fused kernel ----------------------------------


def egg_fused_kernel(x_ref, w_ref, b_ref, out_ref):
    # x_ref:   (N, F)    one graph (batch axis squeezed by BlockSpec)
    # w_ref:   (5F, F)   [wm1 | wm2 | (we_self - we_nbr) | we_nbr | we2]
    # b_ref:   (8, F)    rows 0..3 = bm1, bm2, be1, be2 (rows 4..7 zero pad)
    # out_ref: (N, F)
    n, f = x_ref.shape
    inv_n = 1.0 / float(n)
    inv_sqrt_f = float(1.0 / np.sqrt(f))

    x = x_ref[...]

    # Static, sublane-aligned slices of the packed weight/bias slabs.
    wm1 = w_ref[0 * f:1 * f, :]
    wm2 = w_ref[1 * f:2 * f, :]
    w_delta = w_ref[2 * f:3 * f, :]      # we_self - we_nbr (pre-folded on host)
    w_nbr = w_ref[3 * f:4 * f, :]
    we2 = w_ref[4 * f:5 * f, :]
    bm1 = b_ref[0:1, :]
    bm2 = b_ref[1:2, :]
    be1 = b_ref[2:3, :]
    be2 = b_ref[3:4, :]

    # ---- mapper: mapped = L2(relu(L1(x))) -- never leaves VMEM/vregs
    h = jnp.maximum(
        jnp.dot(x, wm1, preferred_element_type=jnp.float32) + bm1, 0.0)
    mapped = jnp.dot(h, wm2, preferred_element_type=jnp.float32) + bm2

    # ---- edge generation: dense row-softmax of scaled dot-product similarity.
    # A @ A^T expressed directly via dot_general (no explicit transpose).
    scores = jax.lax.dot_general(
        mapped, mapped, (((1,), (1,)), ((), ())),
        preferred_element_type=jnp.float32) * inv_sqrt_f
    scores = scores - jnp.max(scores, axis=-1, keepdims=True)
    e = jnp.exp(scores)
    # Exact division (not approx reciprocal): rows sum to 1 up to FP rounding,
    # which keeps the be2 hoist below exact even for nonzero be2.
    edge_w = e / jnp.sum(e, axis=-1, keepdims=True)               # (N, N)

    # ---- EdgeConv head ------------------------------------------------------
    # cat[x_i, x_j - x_i] @ W1 == x_i @ (W_self - W_nbr) + x_j @ W_nbr
    a_i = jnp.dot(x, w_delta, preferred_element_type=jnp.float32) + be1  # (N,F)
    b_j = jnp.dot(x, w_nbr, preferred_element_type=jnp.float32)          # (N,F)

    # Weighted neighbor reduction in chunks: never materialize (N,N,F).
    #   s_i = sum_j w_ij * relu(a_i + b_j)
    # (static trip count; chunk of 8 keeps the live intermediate to (N,8,F))
    chunk = 8 if n % 8 == 0 else n
    acc = jnp.zeros((n, f), jnp.float32)
    for j0 in range(0, n, chunk):
        b_c = b_j[j0:j0 + chunk, :]                                # (C, F)
        w_c = edge_w[:, j0:j0 + chunk]                             # (N, C)
        h_c = jnp.maximum(a_i[:, None, :] + b_c[None, :, :], 0.0)  # (N, C, F)
        acc = acc + jnp.sum(h_c * w_c[:, :, None], axis=1)

    # we2 hoisted outside the neighbor reduction (exact up to FP reordering):
    #   mean_j( (relu(.)_j @ we2 + be2) * w_ij )
    # = ( (sum_j w_ij * relu(.)_j) @ we2 + be2 * sum_j w_ij ) / N, sum_j w_ij = 1
    out = (jnp.dot(acc, we2, preferred_element_type=jnp.float32) + be2) * inv_n
    out_ref[...] = out


# ----------------------------- wrapper ----------------------------------------


@jax.jit
def egg_module_forward(xb, w_all, b_all):
    """xb: (B, N, F) batch of graphs; w_all: (5F, F); b_all: (8, F)."""
    bsz, n, f = xb.shape

    x_spec = pl.BlockSpec((None, n, f), lambda b: (b, 0, 0))   # per-graph block
    w_spec = pl.BlockSpec((5 * f, f), lambda b: (0, 0))        # shared, DMA'd once
    b_spec = pl.BlockSpec((8, f), lambda b: (0, 0))
    out_spec = pl.BlockSpec((None, n, f), lambda b: (b, 0, 0))

    # Advisory cost hint for XLA's scheduler.
    flops_per_graph = 5 * 2 * n * f * f + 2 * n * n * f + 4 * n * n * f
    cost = pl.CostEstimate(
        flops=int(bsz * flops_per_graph),
        transcendentals=int(bsz * n * n),
        bytes_accessed=int(xb.size * 4 + w_all.size * 4 + b_all.size * 4
                           + bsz * n * f * 4),
    )

    # Single fused launch per batch; everything fits VMEM comfortably here.
    # For much larger N: tile the target-node axis ("parallel"), block the
    # neighbor axis ("arbitrary") with an online-softmax carry, and size the
    # neighbor block per generation (v7x: 64 MiB VMEM -> ~half the v6e tile;
    # v5e: raise vmem_limit_bytes above its 16 MiB default scoped limit).
    return pl.pallas_call(
        egg_fused_kernel,
        out_shape=jax.ShapeDtypeStruct((bsz, n, f), jnp.float32),
        grid=(bsz,),
        in_specs=[x_spec, w_spec, b_spec],
        out_specs=out_spec,
        compiler_params=pltpu.CompilerParams(
            dimension_semantics=("parallel",)),   # engages both v7x TCs
        cost_estimate=cost,
    )(xb, w_all, b_all)


# ----------------------------- reference (pure JAX, unhoisted form) -----------


def egg_module_reference(x, params):
    hp = jax.lax.Precision.HIGHEST
    n, f = x.shape
    h = jnp.maximum(jnp.dot(x, params["wm1"], precision=hp) + params["bm1"], 0.0)
    mapped = jnp.dot(h, params["wm2"], precision=hp) + params["bm2"]

    scores = jnp.dot(mapped, mapped.T, precision=hp) / jnp.sqrt(jnp.float32(f))
    w = jax.nn.softmax(scores, axis=-1)

    a_i = jnp.dot(x, params["we_self"] - params["we_nbr"], precision=hp) + params["be1"]
    b_j = jnp.dot(x, params["we_nbr"], precision=hp)
    hidden = jnp.maximum(a_i[:, None, :] + b_j[None, :, :], 0.0)
    msg = jnp.einsum("tnf,fg->tng", hidden, params["we2"], precision=hp) + params["be2"]
    return jnp.mean(msg * w[:, :, None], axis=1)


# ----------------------------- params -----------------------------------------


def make_params(key, f):
    ks = jax.random.split(key, 9)
    s = 1.0 / np.sqrt(f)
    s2 = 1.0 / np.sqrt(2 * f)
    return {
        # mapper: Linear(F,F) -> ReLU -> Linear(F,F)
        "wm1": jax.random.uniform(ks[0], (f, f), jnp.float32, -s, s),
        "bm1": jax.random.uniform(ks[1], (1, f), jnp.float32, -s, s),
        "wm2": jax.random.uniform(ks[2], (f, f), jnp.float32, -s, s),
        "bm2": jax.random.uniform(ks[3], (1, f), jnp.float32, -s, s),
        # EdgeConv mlp: Linear(2F,F) split into [self | neighbor] halves
        "we_self": jax.random.uniform(ks[4], (f, f), jnp.float32, -s2, s2),
        "we_nbr": jax.random.uniform(ks[5], (f, f), jnp.float32, -s2, s2),
        "be1": jax.random.uniform(ks[6], (1, f), jnp.float32, -s2, s2),
        "we2": jax.random.uniform(ks[7], (f, f), jnp.float32, -s, s),
        # nonzero so the be2 hoist is actually exercised by the test
        "be2": jax.random.uniform(ks[8], (1, f), jnp.float32, -s, s),
    }


def pack_params(params):
    """Pack the 5 matrices into one (5F,F) slab and 4 biases into one (8,F) slab.

    Done ONCE outside the forward call (not per-call wrapper work).
    """
    f = params["wm1"].shape[0]
    w_all = jnp.concatenate(
        [params["wm1"], params["wm2"],
         params["we_self"] - params["we_nbr"],   # pre-fold the 'self' delta
         params["we_nbr"], params["we2"]], axis=0)                    # (5F, F)
    b_all = jnp.concatenate(
        [params["bm1"], params["bm2"], params["be1"], params["be2"],
         jnp.zeros((4, f), jnp.float32)], axis=0)                     # (8, F)
    return w_all, b_all


# ----------------------------- main -------------------------------------------


if __name__ == "__main__":
    key = jax.random.PRNGKey(0)
    k_x, k_p = jax.random.split(key)

    batch, n_nodes, in_feat = 4, 16, 32   # in_feat == out_feat (EdgeConv on raw x)
    x = jax.random.normal(k_x, (batch, n_nodes, in_feat), jnp.float32)
    params = make_params(k_p, in_feat)
    w_all, b_all = pack_params(params)

    out = egg_module_forward(x, w_all, b_all)
    out = jax.block_until_ready(out)

    ref = jax.vmap(lambda xg: egg_module_reference(xg, params))(x)
    np.testing.assert_allclose(np.asarray(out), np.asarray(ref),
                               rtol=1e-4, atol=1e-4)
    assert out.shape == (batch, n_nodes, in_feat)
    print("KERNEL_OK")
</pallas_src>

<mosaic_0001>
module attributes {stable_mosaic.version = 11 : i64} {
  func.func @egg_fused_kernel(%arg0: i32, %arg1: memref<1x16x32xf32, #tpu.memory_space<vmem>>, %arg2: memref<160x32xf32, #tpu.memory_space<vmem>>, %arg3: memref<8x32xf32, #tpu.memory_space<vmem>>, %arg4: memref<1x16x32xf32, #tpu.memory_space<vmem>>) attributes {dimension_semantics = [#tpu.dimension_semantics<parallel>], iteration_bounds = array<i64: 4>, scalar_prefetch = 0 : i64, scratch_operands = 0 : i64, tpu.core_type = #tpu.core_type<tc>, window_params = [{transform_indices = @transform_0, window_bounds = array<i64: 1, 16, 32>}, {pipeline_mode = #tpu.pipeline_mode<synchronous>, transform_indices = @transform_1, window_bounds = array<i64: 160, 32>}, {pipeline_mode = #tpu.pipeline_mode<synchronous>, transform_indices = @transform_2, window_bounds = array<i64: 8, 32>}, {transform_indices = @transform_3, window_bounds = array<i64: 1, 16, 32>}]} {
    %c0 = arith.constant 0 : index
    %c0_0 = arith.constant 0 : index
    %c0_1 = arith.constant 0 : index
    %0 = vector.load %arg1[%c0, %c0_0, %c0_1] : memref<1x16x32xf32, #tpu.memory_space<vmem>>, vector<1x16x32xf32>
    %1 = vector.shape_cast %0 : vector<1x16x32xf32> to vector<16x32xf32>
    %c0_2 = arith.constant 0 : index
    %c0_3 = arith.constant 0 : index
    %2 = vector.load %arg2[%c0_2, %c0_3] : memref<160x32xf32, #tpu.memory_space<vmem>>, vector<32x32xf32>
    %c32 = arith.constant 32 : index
    %c0_4 = arith.constant 0 : index
    %3 = vector.load %arg2[%c32, %c0_4] : memref<160x32xf32, #tpu.memory_space<vmem>>, vector<32x32xf32>
    %c64 = arith.constant 64 : index
    %c0_5 = arith.constant 0 : index
    %4 = vector.load %arg2[%c64, %c0_5] : memref<160x32xf32, #tpu.memory_space<vmem>>, vector<32x32xf32>
    %c96 = arith.constant 96 : index
    %c0_6 = arith.constant 0 : index
    %5 = vector.load %arg2[%c96, %c0_6] : memref<160x32xf32, #tpu.memory_space<vmem>>, vector<32x32xf32>
    %c128 = arith.constant 128 : index
    %c0_7 = arith.constant 0 : index
    %6 = vector.load %arg2[%c128, %c0_7] : memref<160x32xf32, #tpu.memory_space<vmem>>, vector<32x32xf32>
    %c0_8 = arith.constant 0 : index
    %c0_9 = arith.constant 0 : index
    %7 = vector.load %arg3[%c0_8, %c0_9] : memref<8x32xf32, #tpu.memory_space<vmem>>, vector<1x32xf32>
    %c1 = arith.constant 1 : index
    %c0_10 = arith.constant 0 : index
    %8 = vector.load %arg3[%c1, %c0_10] : memref<8x32xf32, #tpu.memory_space<vmem>>, vector<1x32xf32>
    %c2 = arith.constant 2 : index
    %c0_11 = arith.constant 0 : index
    %9 = vector.load %arg3[%c2, %c0_11] : memref<8x32xf32, #tpu.memory_space<vmem>>, vector<1x32xf32>
    %c3 = arith.constant 3 : index
    %c0_12 = arith.constant 0 : index
    %10 = vector.load %arg3[%c3, %c0_12] : memref<8x32xf32, #tpu.memory_space<vmem>>, vector<1x32xf32>
    %cst = arith.constant dense<0.000000e+00> : vector<16x32xf32>
    %11 = tpu.matmul %1, %2, %cst {dimension_numbers = #tpu.dot_dimension_numbers<[1], [0], [0], [1], [0, 0, 1, 1], [], []>} : vector<16x32xf32>, vector<32x32xf32>, vector<16x32xf32> -> vector<16x32xf32>
    %12 = vector.broadcast %7 : vector<1x32xf32> to vector<16x32xf32>
    %13 = arith.addf %11, %12 : vector<16x32xf32>
    %cst_13 = arith.constant 0.000000e+00 : f32
    %14 = vector.broadcast %cst_13 : f32 to vector<16x32xf32>
    %15 = arith.maximumf %13, %14 : vector<16x32xf32>
    %cst_14 = arith.constant dense<0.000000e+00> : vector<16x32xf32>
    %16 = tpu.matmul %15, %3, %cst_14 {dimension_numbers = #tpu.dot_dimension_numbers<[1], [0], [0], [1], [0, 0, 1, 1], [], []>} : vector<16x32xf32>, vector<32x32xf32>, vector<16x32xf32> -> vector<16x32xf32>
    %17 = vector.broadcast %8 : vector<1x32xf32> to vector<16x32xf32>
    %18 = arith.addf %16, %17 : vector<16x32xf32>
    %cst_15 = arith.constant dense<0.000000e+00> : vector<16x16xf32>
    %19 = tpu.matmul %18, %18, %cst_15 {dimension_numbers = #tpu.dot_dimension_numbers<[1], [1], [0], [0], [0, 0, 1, 0], [], []>} : vector<16x32xf32>, vector<16x32xf32>, vector<16x16xf32> -> vector<16x16xf32>
    %cst_16 = arith.constant 0.176776692 : f32
    %20 = vector.broadcast %cst_16 : f32 to vector<16x16xf32>
    %21 = arith.mulf %19, %20 : vector<16x16xf32>
    %cst_17 = arith.constant dense<0xFF800000> : vector<16xf32>
    %22 = vector.multi_reduction <maximumf>, %21, %cst_17 [1] : vector<16x16xf32> to vector<16xf32>
    %23 = vector.shape_cast %22 : vector<16xf32> to vector<16x1xf32>
    %24 = vector.broadcast %23 : vector<16x1xf32> to vector<16x16xf32>
    %25 = arith.subf %21, %24 : vector<16x16xf32>
    %26 = math.exp %25 : vector<16x16xf32>
    %cst_18 = arith.constant dense<0.000000e+00> : vector<16xf32>
    %27 = vector.multi_reduction <add>, %26, %cst_18 [1] : vector<16x16xf32> to vector<16xf32>
    %28 = vector.shape_cast %27 : vector<16xf32> to vector<16x1xf32>
    %29 = vector.broadcast %28 : vector<16x1xf32> to vector<16x16xf32>
    %30 = arith.divf %26, %29 : vector<16x16xf32>
    %cst_19 = arith.constant dense<0.000000e+00> : vector<16x32xf32>
    %31 = tpu.matmul %1, %4, %cst_19 {dimension_numbers = #tpu.dot_dimension_numbers<[1], [0], [0], [1], [0, 0, 1, 1], [], []>} : vector<16x32xf32>, vector<32x32xf32>, vector<16x32xf32> -> vector<16x32xf32>
    %32 = vector.broadcast %9 : vector<1x32xf32> to vector<16x32xf32>
    %33 = arith.addf %31, %32 : vector<16x32xf32>
    %cst_20 = arith.constant dense<0.000000e+00> : vector<16x32xf32>
    %34 = tpu.matmul %1, %5, %cst_20 {dimension_numbers = #tpu.dot_dimension_numbers<[1], [0], [0], [1], [0, 0, 1, 1], [], []>} : vector<16x32xf32>, vector<32x32xf32>, vector<16x32xf32> -> vector<16x32xf32>
    %cst_21 = arith.constant 0.000000e+00 : f32
    %35 = vector.broadcast %cst_21 : f32 to vector<16x32xf32>
    %36 = vector.extract_strided_slice %34 {offsets = [0, 0], sizes = [8, 32], strides = [1, 1]} : vector<16x32xf32> to vector<8x32xf32>
    %37 = vector.extract_strided_slice %30 {offsets = [0, 0], sizes = [16, 8], strides = [1, 1]} : vector<16x16xf32> to vector<16x8xf32>
    %38 = vector.shape_cast %33 : vector<16x32xf32> to vector<16x1x32xf32>
    %39 = vector.shape_cast %36 : vector<8x32xf32> to vector<1x8x32xf32>
    %40 = vector.broadcast %38 : vector<16x1x32xf32> to vector<16x8x32xf32>
    %41 = vector.broadcast %39 : vector<1x8x32xf32> to vector<16x8x32xf32>
    %42 = arith.addf %40, %41 : vector<16x8x32xf32>
    %cst_22 = arith.constant 0.000000e+00 : f32
    %43 = vector.broadcast %cst_22 : f32 to vector<16x8x32xf32>
    %44 = arith.maximumf %42, %43 : vector<16x8x32xf32>
    %45 = vector.shape_cast %37 : vector<16x8xf32> to vector<16x8x1xf32>
    %46 = vector.broadcast %45 : vector<16x8x1xf32> to vector<16x8x32xf32>
    %47 = arith.mulf %44, %46 : vector<16x8x32xf32>
    %cst_23 = arith.constant dense<0.000000e+00> : vector<16x32xf32>
    %48 = vector.multi_reduction <add>, %47, %cst_23 [1] : vector<16x8x32xf32> to vector<16x32xf32>
    %49 = arith.addf %35, %48 : vector<16x32xf32>
    %50 = vector.extract_strided_slice %34 {offsets = [8, 0], sizes = [8, 32], strides = [1, 1]} : vector<16x32xf32> to vector<8x32xf32>
    %51 = vector.extract_strided_slice %30 {offsets = [0, 8], sizes = [16, 8], strides = [1, 1]} : vector<16x16xf32> to vector<16x8xf32>
    %52 = vector.shape_cast %33 : vector<16x32xf32> to vector<16x1x32xf32>
    %53 = vector.shape_cast %50 : vector<8x32xf32> to vector<1x8x32xf32>
    %54 = vector.broadcast %52 : vector<16x1x32xf32> to vector<16x8x32xf32>
    %55 = vector.broadcast %53 : vector<1x8x32xf32> to vector<16x8x32xf32>
    %56 = arith.addf %54, %55 : vector<16x8x32xf32>
    %cst_24 = arith.constant 0.000000e+00 : f32
    %57 = vector.broadcast %cst_24 : f32 to vector<16x8x32xf32>
    %58 = arith.maximumf %56, %57 : vector<16x8x32xf32>
    %59 = vector.shape_cast %51 : vector<16x8xf32> to vector<16x8x1xf32>
    %60 = vector.broadcast %59 : vector<16x8x1xf32> to vector<16x8x32xf32>
    %61 = arith.mulf %58, %60 : vector<16x8x32xf32>
    %cst_25 = arith.constant dense<0.000000e+00> : vector<16x32xf32>
    %62 = vector.multi_reduction <add>, %61, %cst_25 [1] : vector<16x8x32xf32> to vector<16x32xf32>
    %63 = arith.addf %49, %62 : vector<16x32xf32>
    %cst_26 = arith.constant dense<0.000000e+00> : vector<16x32xf32>
    %64 = tpu.matmul %63, %6, %cst_26 {dimension_numbers = #tpu.dot_dimension_numbers<[1], [0], [0], [1], [0, 0, 1, 1], [], []>} : vector<16x32xf32>, vector<32x32xf32>, vector<16x32xf32> -> vector<16x32xf32>
    %65 = vector.broadcast %10 : vector<1x32xf32> to vector<16x32xf32>
    %66 = arith.addf %64, %65 : vector<16x32xf32>
    %cst_27 = arith.constant 6.250000e-02 : f32
    %67 = vector.broadcast %cst_27 : f32 to vector<16x32xf32>
    %68 = arith.mulf %66, %67 : vector<16x32xf32>
    %c0_28 = arith.constant 0 : index
    %c0_29 = arith.constant 0 : index
    %c0_30 = arith.constant 0 : index
    %69 = vector.load %arg4[%c0_28, %c0_29, %c0_30] : memref<1x16x32xf32, #tpu.memory_space<vmem>>, vector<1x16x32xf32>
    %70 = vector.shape_cast %69 : vector<1x16x32xf32> to vector<16x32xf32>
    %71 = vector.shape_cast %68 : vector<16x32xf32> to vector<1x16x32xf32>
    tpu.vector_store %arg4[%c0_28, %c0_29, %c0_30], %71 {strides = array<i32>} : memref<1x16x32xf32, #tpu.memory_space<vmem>>, vector<1x16x32xf32>,
    return
  }
  func.func @transform_0(%arg0: i32) -> (i32, i32, i32) {
    %c0_i32 = arith.constant 0 : i32
    %c0_i32_0 = arith.constant 0 : i32
    %c0_i32_1 = arith.constant 0 : i32
    return %arg0, %c0_i32, %c0_i32_0 : i32, i32, i32
  }
  func.func @transform_1(%arg0: i32) -> (i32, i32) {
    %c0_i32 = arith.constant 0 : i32
    %c0_i32_0 = arith.constant 0 : i32
    %c0_i32_1 = arith.constant 0 : i32
    return %c0_i32, %c0_i32_0 : i32, i32
  }
  func.func @transform_2(%arg0: i32) -> (i32, i32) {
    %c0_i32 = arith.constant 0 : i32
    %c0_i32_0 = arith.constant 0 : i32
    %c0_i32_1 = arith.constant 0 : i32
    return %c0_i32, %c0_i32_0 : i32, i32
  }
  func.func @transform_3(%arg0: i32) -> (i32, i32, i32) {
    %c0_i32 = arith.constant 0 : i32
    %c0_i32_0 = arith.constant 0 : i32
    %c0_i32_1 = arith.constant 0 : i32
    return %arg0, %c0_i32, %c0_i32_0 : i32, i32, i32
  }
}

</mosaic_0001>

<bundles_post_ra>
// kernel: egg_module_forward.1
= control target key start
LH: loop header
LB: loop body
LE: loop exit
PB: predicated region body
PF: predicated region fallthrough
CT: control target
= control target key end

     0   :  { %8 = vsyncpa [#allocation3], 0  ;;  %s2391_s0 = inlined_call_operand.vmem [shape: f32[4,16,32], index: 0, kind: input, shape index: {}]   ;;  %s2392_s1 = inlined_call_operand.vmem [shape: f32[160,32], index: 1, kind: input, shape index: {}]   ;;  %s2393_s2 = inlined_call_operand.vmem [shape: f32[8,32], index: 2, kind: input, shape index: {}]   ;;  %s2394_s3 = inlined_call_operand.hbm [shape: f32[4,16,32], index: 3, kind: output, shape index: {}]  }
   0x1   :  { %10 = vsyncpa [#allocation3 + $0x1], 0  ;;  %s1848_s12 = smov 0   ;;  %s1850_s13 = smov 0  }
   0x2   :  { %s1852_s14 = smov 0   ;;  %s1854_s15 = smov 0  }
   0x3 LB: > { %s1869_s16 = sadd.s32 4294967295, %s1822_s15   ;;  %s1536_s17 = sadd.s32 4294967294, %s1822_s15   ;;  %s1822_s15 = sphi %s1854_s15, %s2410_s15   ;;  %s1818_s14 = sphi %s1852_s14, %s2409_s14   ;;  %s1814_s13 = sphi %s1850_s13, %s2408_s13   ;;  %s1810_s12 = sphi %s1848_s12, %s2407_s12  }
   0x4   : > { %s1873_s18 = sadd.s32 1, %s1822_s15   ;;  %s91_s19 = sadd.s32 1, %s1818_s14 }
   0x5   : > { %s88_s20 = ssub.s32 %s1822_s15, %s1873_s18  ;;  %p101_p0 = scmp.ne.s32.totalorder %s1818_s14, %s1814_s13 }
   0x6   : > { %p89_p1 = scmp.eq.s32.totalorder %s88_s20, 0  ;;  %p102_p2 = scmp.eq.s32.totalorder %s1869_s16, 3 }
   0x7   : > { %p107_p3 = scmp.ne.s32.totalorder %s1814_s13, %s1810_s12  ;;  %p108_p4 = scmp.eq.s32.totalorder %s1536_s17, 3 }
   0x8   : > { %s1884_s21 = scalar_select %p89_p1, %s1818_s14, %s91_s19  }
   0x9   : > { %p1886_p5 = por %p102_p2, %p101_p0  ;;  %p1890_p6 = por %p108_p4, %p107_p3 }
   0xa   : > { %p1539_p7 = scmp.ge.s32.totalorder %s1822_s15, 1  ;;  %p140_p8 = scmp.lt.s32.totalorder %s1822_s15, 5 }
   0xc   : > { %p141_p9 = pnand %p1539_p7, %p140_p8 }
   0xd   : > { %v171_v0 = vld [vmem:[%s2392_s1] sm:$0xff] (!%p141_p9)  ;;  %v172_v1 = vld [vmem:[%s2392_s1 + $0x8] sm:$0xff] (!%p141_p9)  ;;  %v173_v2 = vld [vmem:[%s2392_s1 + $0x10] sm:$0xff] (!%p141_p9)  ;;  %p164_p10 = scmp.lt.s32.totalorder (!%p141_p9), %s1869_s16, 3  ;;  %vm199_vm0 = vcmask (!%p141_p9), 261120   ;;  %vm451_vm2 = vcmask (!%p141_p9), 130048   ;;  %v634_v55 = vlaneseq (!%p141_p9) }
   0xe   : > { %144 = sbr.rel (%p141_p9) target bundleno = 1440 (0x5a0), region = 32  ;;  %v1664_v3 = vpack.c.bf16 (!%p141_p9), %v172_v1, %v171_v0  ;;  %v174_v4 = vld [vmem:[%s2392_s1 + $0x18] sm:$0xff] (!%p141_p9)  ;;  %v175_v5 = vld [vmem:[%s2392_s1 + $0x20] sm:$0xff] (!%p141_p9)  ;;  %v176_v6 = vld [vmem:[%s2392_s1 + $0x28] sm:$0xff] (!%p141_p9)  ;;  %v1824_v56 = vmov (!%p141_p9), 1966171168  }
   0xf   : > { %v1668_v7 = vpack.c.bf16 (!%p141_p9), %v174_v4, %v173_v2  ;;  %v1672_v8 = vpack.c.bf16 (!%p141_p9), %v176_v6, %v175_v5  ;;  %v177_v11 = vld [vmem:[%s2392_s1 + $0x30] sm:$0xff] (!%p141_p9)  ;;  %v178_v12 = vld [vmem:[%s2392_s1 + $0x38] sm:$0xff] (!%p141_p9)  ;;  %v1543_v14 = vld [vmem:[%s2393_s2] ss:$0 sm:$0xff] (!%p141_p9)  ;;  %v632_v57 = vunpack.c.l.s4 (!%p141_p9), %v1824_v56  ;;  %v1971_v58 = vshrl.u32 (!%p141_p9), %v634_v55, 7  ;;  %s161_s17 = sand.u32 (!%p141_p9), 1, %s1814_s13  }
  0x10   : > { %1665 = vmatprep.subr.bf16.mxu0 (!%p141_p9), %v1664_v3  ;;  %v1676_v13 = vpack.c.bf16 (!%p141_p9), %v178_v12, %v177_v11  ;;  %v1546_v21 = vld [vmem:[%s2393_s2 + $0x1] ss:$0 sm:$0xff] (!%p141_p9)  ;;  %vm1681_vm1 = vmpackc.low (!%p141_p9), %vm199_vm0, %vm199_vm0  ;;  %v180_v34 = vld [vmem:[%s2392_s1 + $0x48] sm:$0xff] (!%p141_p9)  ;;  %vm1356_vm3 = vcmask (!%p141_p9), 1041409   ;;  %vm1358_vm4 = vcmask (!%p141_p9), 1042434   ;;  %vm1360_vm5 = vcmask (!%p141_p9), 1043459  }
  0x11   : > { %1667 = vmatpush3.bf16.msra.mxu0 (!%p141_p9), %v1664_v3  ;;  %1673 = vmatprep.subr.bf16.mxu1 (!%p141_p9), %v1672_v8  ;;  %v179_v33 = vld [vmem:[%s2392_s1 + $0x40] sm:$0xff] (!%p141_p9)  ;;  %v181_v35 = vld [vmem:[%s2392_s1 + $0x50] sm:$0xff] (!%p141_p9)  ;;  %v182_v37 = vld [vmem:[%s2392_s1 + $0x58] sm:$0xff] (!%p141_p9)  ;;  %v633_v60 = vunpack.c.0.s8 (!%p141_p9), %v632_v57  ;;  %v1985_v5 = vsub.s32 (!%p141_p9), 0, %v1971_v58  ;;  %v863_v56 = vsub.s32 (!%p141_p9), 3, %v1971_v58  ;;  %vm1362_vm6 = vcmask (!%p141_p9), 1044484  }
  0x12   : > { %1669 = vmatprep.subr.bf16.mxu0 (!%p141_p9), %v1668_v7  ;;  %1675 = vmatpush3.bf16.msra.mxu1 (!%p141_p9), %v1672_v8  ;;  %v1686_v36 = vpack.c.bf16 (!%p141_p9), %v180_v34, %v179_v33  ;;  %v183_v38 = vld [vmem:[%s2392_s1 + $0x60] sm:$0xff] (!%p141_p9)  ;;  %v184_v39 = vld [vmem:[%s2392_s1 + $0x68] sm:$0xff] (!%p141_p9)  ;;  %v1690_v40 = vpack.c.bf16 (!%p141_p9), %v182_v37, %v181_v35  ;;  %v185_v42 = vld [vmem:[%s2392_s1 + $0x70] sm:$0xff] (!%p141_p9)  ;;  %vm1364_vm7 = vcmask (!%p141_p9), 1045509   ;;  %vm1366_vm8 = vcmask (!%p141_p9), 1046534   ;;  %s1567_s27 = sshll.u32 (!%p141_p9), %s1869_s16, 8 }
  0x13   : > { %1677 = vmatprep.subr.bf16.mxu1 (!%p141_p9), %v1676_v13  ;;  %v1694_v41 = vpack.c.bf16 (!%p141_p9), %v184_v39, %v183_v38  ;;  %v186_v43 = vld [vmem:[%s2392_s1 + $0x78] sm:$0xff] (!%p141_p9)  ;;  %v1553_v59 = vld [vmem:[%s2393_s2 + $0x2] ss:$0 sm:$0xff] (!%p141_p9)  ;;  %v1977_v62 = vsub.s32 (!%p141_p9), %v633_v60, %v1971_v58  ;;  %vm1368_vm9 = vcmask (!%p141_p9), 1047559   ;;  %s2346_s30 = scalar_lea.hbm (!%p141_p9), %s2394_s3, %s1567_s27  ;;  %s1825_s5 = smov (!%p141_p9), [#allocation2]  }
  0x14   : > { %v1698_v44 = vpack.c.bf16 (!%p141_p9), %v186_v43, %v185_v42  ;;  %s1764_s6 = sshll.u32 (!%p141_p9), %s1825_s5, 4  ;;  %s1765_s6 = int_to_ptr.vmem [resolvable:$false] %s1764_s6 }
  0x15   : > { %s165_s9 = scalar_select %p164_p10, %s1869_s16, 3  ;;  %1671 = vmatpush3.bf16.msra.mxu0 %v1668_v7 }
  0x16   : > { %1679 = vmatpush3.bf16.msra.mxu1 %v1676_v13  ;;  %s2350_s16 = scalar_lea.sflag [#allocation3], %s161_s17  ;;  %s1766_s7 = scalar_lea.vmem %s1765_s6, 512 }
  0x17   : > { %s1566_s10 = sshll.u32 %s165_s9, 4  ;;  %1687 = vmatprep.subr.bf16.mxu1 %v1686_v36 }
  0x18   : > { %s168_s19 = scalar_lea.vmem %s2391_s0, %s1566_s10 }
  0x19   : > { %v169_v9 = vld [vmem:[%s168_s19] sm:$0xff]  ;;  %v170_v10 = vld [vmem:[%s168_s19 + $0x8] sm:$0xff]  ;;  %s1540_s19 = sshll.u32 %s161_s17, 4 }
  0x1a   : > { %1610 = vmatprep.mubr.msk.f32.mxu0 %vm199_vm0, %v169_v9  ;;  %s163_s25 = scalar_lea.vmem [#allocation2], %s1540_s19 }
  0x1b   : > { %1611 = vmatmul.mubr.msk.f32.vlgmr.msra.gmra.mrb[0].mxu0 %vm199_vm0, %v170_v10  ;;  %s1474_s26 = sshll.u32 %s163_s25, 4  ;;  %s2341_s26 = int_to_ptr.vmem [resolvable:$true] %s1474_s26 }
  0x1c   : > { %s1760_s4 = scalar_lea.vmem %s2341_s26, 256  ;;  %p1767_p0 = scmp.lt.s32.totalorder %s2341_s26, %s1765_s6 }
  0x1d   : > { %p1761_p11 = scmp.ne.s32.totalorder %s2341_s26, %s1760_s4  ;;  %p1768_p1 = scmp.lt.s32.totalorder %s1766_s7, %s1760_s4 }
  0x1f   : > { %p1762_p12 = pnand %p1761_p11, %p1886_p5  ;;  %p1769_p2 = por %p1768_p1, %p1767_p0 }
  0x21   : > { %p1763_p13 = pneg %p1762_p12 }
  0x23   : > { %p1770_p3 = pnand %p1769_p2, %p1763_p13 }
  0xee   : > { %v1612_v15 = vpop.f32.mrb[0].mxu0 }
  0xef   : > { %v278_v16 = vadd.f32 %v1612_v15, %v1543_v14  ;;  %v272_v17 = vpop.f32.mrb[1].mxu0 }
  0xf0   : > { %v273_v18 = vadd.f32 %v1543_v14, %v272_v17 }
  0xf1   : > { %v282_v20 = vmax.f32 %v278_v16, 0.0 }
  0xf2   : > { %v281_v19 = vmax.f32 %v273_v18, 0.0 }
  0xf4   : > { %1621 = vmatprep.mubr.msk.f32.mxu1 %vm199_vm0, %v281_v19 }
  0xf5   : > { %1622 = vmatmul.mubr.msk.f32.vlgmr.msra.gmra.mrb[0].mxu1 %vm199_vm0, %v282_v20 }
  0xf6   : > { %1639 = vmatprep.mubr.msk.f32.mxu1 %vm199_vm0, %v169_v9  ;;  %1689 = vmatpush3.bf16.msra.mxu1 %v1686_v36 }
  0xf7   : > { %1691 = vmatprep.subr.bf16.mxu1 %v1690_v40 }
  0xfa   : > { %1693 = vmatpush3.bf16.msra.mxu1 %v1690_v40 }
  0xfd   : > { %1640 = vmatmul.mubr.msk.f32.vlgmr.msra.gmra.mrb[2].mxu1 %vm199_vm0, %v170_v10 }
 0x1c8   : > { %v1623_v22 = vpop.f32.mrb[0].mxu1 }
 0x1c9   : > { %v365_v23 = vadd.f32 %v1623_v22, %v1546_v21  ;;  %v359_v24 = vpop.f32.mrb[1].mxu1 }
 0x1ca   : > { %v360_v25 = vadd.f32 %v1546_v21, %v359_v24 }
 0x1cc   : > { %v1680_v26 = vpack.c.bf16 %v365_v23, %v360_v25  ;;  %1628 = vmatprep.mubr.msk.f32.mxu0 %vm199_vm0, %v360_v25 }
 0x1ce   : > { %1682 = vmatprep.subr.msk.bf16.mxu0 %vm1681_vm1, %v1680_v26 }
 0x1cf   : > { %1685 = vmatpush3.bf16.xpose.msk.msra.mxu0 %vm1681_vm1, %v1680_v26 }
 0x1d0   : > { %1695 = vmatprep.subr.bf16.mxu0 %v1694_v41  ;;  %v1641_v61 = vpop.f32.mrb[2].mxu1 }
 0x1d1   : > { %v550_v63 = vadd.f32 %v1641_v61, %v1553_v59  ;;  %v544_v1 = vpop.f32.mrb[3].mxu1 }
 0x1d3   : > { %v686_v3 = vrot.slane %v550_v63, %v1977_v62 }
 0x1d5   : > { %v694_v4 = vcombine.high %v686_v3, %v686_v3 }
 0x1d6   : > { %1629 = vmatmul.mubr.msk.f32.vlgmr.msra.gmra.mrb[2].mxu0 %vm199_vm0, %v365_v23 }
 0x1d7   : > { %1650 = vmatprep.mubr.msk.f32.mxu0 %vm199_vm0, %v169_v9  ;;  %1697 = vmatpush3.bf16.msra.mxu0 %v1694_v41  ;;  %v716_v6 = vrot.slane %v694_v4, %v1977_v62  ;;  %v702_v9 = vrot.slane %v686_v3, %v1977_v62 }
 0x1d8   : > { %1699 = vmatprep.subr.bf16.mxu0 %v1698_v44 }
 0x1d9   : > { %v767_v7 = vrot.slane %v716_v6, %v1985_v5  ;;  %v763_v12 = vrot.slane %v702_v9, %v1985_v5  ;;  %v724_v15 = vcombine.high %v702_v9, %v702_v9  ;;  %v726_v36 = vcombine.high %v716_v6, %v716_v6 }
 0x1db   : > { %1701 = vmatpush3.bf16.msra.mxu0 %v1698_v44  ;;  %v771_v23 = vrot.slane %v724_v15, %v1985_v5  ;;  %v775_v43 = vrot.slane %v726_v36, %v1985_v5 }
 0x1de   : > { %1651 = vmatmul.mubr.msk.f32.vlgmr.msra.gmra.mrb[4].mxu0 %vm199_vm0, %v170_v10  ;;  %v545_v10 = vadd.f32 %v1553_v59, %v544_v1 }
 0x1e0   : > { %v637_v11 = vrot.slane %v545_v10, %v1977_v62 }
 0x1e2   : > { %v653_v16 = vrot.slane %v637_v11, %v1977_v62  ;;  %v645_v18 = vcombine.high %v637_v11, %v637_v11 }
 0x1e4   : > { %v675_v21 = vcombine.high %v653_v16, %v653_v16  ;;  %v2006_v22 = vrot.slane %v653_v16, %v1985_v5  ;;  %v2010_v24 = vrot.slane %v645_v18, %v1977_v62 }
 0x1e6   : > { %v677_v35 = vcombine.high %v2010_v24, %v2010_v24 }
 0x1e8   : > { %v743_v42 = vrot.slane %v677_v35, %v1985_v5 }
 0x2a9   : > { %v1630_v27 = vpop.f32.mrb[2].mxu0 }
 0x2aa   : > { %v440_v28 = vpop.f32.mrb[3].mxu0  ;;  %v450_v30 = vmul.f32 0.17677669, %v1630_v27  ;;  %v849_v27 = vsub.s32 1, %v1971_v58 }
 0x2ab   : > { %v449_v29 = vmul.f32 0.17677669, %v440_v28  ;;  %v2021_v28 = vrot.slane %v675_v21, %v1985_v5 }
 0x2ac   : > { %v455_v32 = vsel %vm451_vm2, %v450_v30, -inf }
 0x2ad   : > { %v452_v31 = vsel %vm451_vm2, %v449_v29, -inf }
 0x2ae   : > { %453 = vmax.xlane.f32.xlu0 %v452_v31  ;;  %v630_v31 = vcombine.high %v545_v10, %v545_v10 }
 0x2b0   : > { %v644_v41 = vrot.slane %v630_v31, %v1977_v62 }
 0x2b1   : > { %v1979_v0 = vpop.f32.mrb[4].mxu0 }
 0x2b2   : > { %456 = vmax.xlane.f32.xlu0 %v455_v32  ;;  %v1981_v2 = vpop.f32.mrb[5].mxu0  ;;  %v2000_v19 = vadd.f32 %v1979_v0, %v763_v12  ;;  %v2003_v20 = vadd.f32 %v1979_v0, %v767_v7  ;;  %v2030_v34 = vadd.f32 %v1979_v0, %v771_v23  ;;  %v646_v60 = vcombine.high %v644_v41, %v644_v41 }
 0x2b3   : > { %v1990_v8 = vadd.f32 %v767_v7, %v1981_v2  ;;  %v1996_v14 = vadd.f32 %v763_v12, %v1981_v2  ;;  %v2014_v25 = vadd.f32 %v2006_v22, %v1981_v2  ;;  %v2017_v26 = vadd.f32 %v771_v23, %v1981_v2 }
 0x2b4   : > { %v2027_v33 = vadd.f32 %v2021_v28, %v1981_v2  ;;  %v674_v7 = vrot.slane %v646_v60, %v1977_v62  ;;  %v870_v12 = vsub.s32 4, %v1971_v58  ;;  %v891_v60 = vsub.s32 7, %v1971_v58 }
 0x2b6   : > { %v751_v10 = vrot.slane %v674_v7, %v1985_v5 }
 0x33b   : > { %v454_v45 = vpop.xlane.xlu0 %453 }
 0x33c   : > { %v458_v46 = vsub.f32 %v449_v29, %v454_v45  ;;  %v856_v45 = vsub.s32 2, %v1971_v58 }
 0x33e   : > { %v460_v49 = vmul.f32 1.442695, %v458_v46 }
 0x33f   : > { %v457_v47 = vpop.xlane.xlu0 %456 }
 0x340   : > { %v459_v48 = vsub.f32 %v450_v30, %v457_v47  ;;  %v679_v30 = vcombine.high %v550_v63, %v550_v63  ;;  %v660_v47 = vrot.slane %v644_v41, %v1977_v62 }
 0x342   : > { %v462_v50 = vmul.f32 1.442695, %v459_v48  ;;  %v693_v40 = vrot.slane %v679_v30, %v1977_v62  ;;  %v2049_v48 = vadd.f32 %v743_v42, %v1981_v2  ;;  %v676_v21 = vcombine.high %v660_v47, %v660_v47 }
 0x344   : > { %1752 = vpow2.f32 %v462_v50  ;;  %v709_v46 = vrot.slane %v693_v40, %v1977_v62  ;;  %v2055_v50 = vadd.f32 %v1979_v0, %v743_v42  ;;  %v695_v57 = vcombine.high %v693_v40, %v693_v40 }
 0x345   : > { %1754 = vpow2.f32 %v460_v49  ;;  %v2052_v49 = vadd.f32 %v775_v43, %v1981_v2  ;;  %v755_v30 = vrot.slane %v676_v21, %v1985_v5  ;;  %v678_v42 = vcombine.high %v674_v7, %v674_v7 }
 0x346   : > { %v779_v55 = vrot.slane %v709_v46, %v1985_v5  ;;  %v723_v9 = vrot.slane %v695_v57, %v1977_v62  ;;  %v725_v23 = vcombine.high %v709_v46, %v709_v46  ;;  %v834_v21 = vmax.f32 %v2017_v26, 0.0 }
 0x347   : > { %v2110_v35 = vadd.f32 %v755_v30, %v1981_v2  ;;  %v2120_v40 = vadd.f32 %v1979_v0, %v755_v30  ;;  %v826_v30 = vmax.f32 %v2027_v33, 0.0 }
 0x348   : > { %v2076_v63 = vadd.f32 %v779_v55, %v1981_v2  ;;  %v2085_v6 = vadd.f32 %v1979_v0, %v779_v55  ;;  %v783_v11 = vrot.slane %v723_v9, %v1985_v5  ;;  %v787_v31 = vrot.slane %v725_v23, %v1985_v5 }
 0x34a   : > { %v2096_v15 = vadd.f32 %v783_v11, %v1981_v2  ;;  %v2104_v18 = vadd.f32 %v1979_v0, %v783_v11  ;;  %v2113_v36 = vadd.f32 %v787_v31, %v1981_v2  ;;  %v2155_v7 = vadd.f32 %v1979_v0, %v787_v31 }
 0x34b   : > { %v1122_v31 = vmax.f32 %v2030_v34, 0.0 }
 0x34e   : > { %v1753_v51 = vpop.eup %1752 }
 0x34f   : > { %v467_v52 = vsel %vm451_vm2, %v1753_v51, 0.0  ;;  %v1755_v53 = vpop.eup %1754 }
 0x350   : > { %468 = vadd.xlane.f32.xlu1 %v467_v52  ;;  %v464_v54 = vsel %vm451_vm2, %v1755_v53, 0.0 }
 0x354   : > { %465 = vadd.xlane.f32.xlu1 %v464_v54  ;;  %v747_v54 = vrot.slane %v660_v47, %v1985_v5 }
 0x356   : > { %v2073_v61 = vadd.f32 %v747_v54, %v1981_v2  ;;  %v2082_v4 = vadd.f32 %v1979_v0, %v747_v54 }
 0x358   : > { %v828_v26 = vmax.f32 %v2073_v61, 0.0 }
 0x3dd   : > { %v469_v13 = vpop.xlane.xlu1 %468 }
 0x3de   : > { %1756 = vrcp.f32 %v469_v13  ;;  %v2093_v13 = vadd.f32 %v751_v10, %v1981_v2 }
 0x3e1   : > { %v466_v17 = vpop.xlane.xlu1 %465 }
 0x3e2   : > { %1758 = vrcp.f32 %v466_v17  ;;  %v2101_v17 = vadd.f32 %v1979_v0, %v751_v10 }
 0x3e8   : > { %v1757_v29 = vpop.eup %1756 }
 0x3e9   : > { %v2023_v32 = vmul.f32 %v1757_v29, %v1753_v51  ;;  %v2058_v51 = vadd.f32 %v1979_v0, %v775_v43  ;;  %v877_v29 = vsub.s32 5, %v1971_v58  ;;  %v884_v43 = vsub.s32 6, %v1971_v58 }
 0x3eb   : > { %v906_v37 = vrot.slane %v2023_v32, %v849_v27  ;;  %v899_v38 = vrot.slane %v2023_v32, %v1985_v5  ;;  %v913_v52 = vrot.slane %v2023_v32, %v856_v45  ;;  %v920_v1 = vrot.slane %v2023_v32, %v863_v56 }
 0x3ec   : > { %v1759_v39 = vpop.eup %1758  ;;  %v927_v16 = vrot.slane %v2023_v32, %v870_v12  ;;  %v941_v47 = vrot.slane %v2023_v32, %v884_v43  ;;  %v948_v58 = vrot.slane %v2023_v32, %v891_v60 }
 0x3ed   : > { %908 = vbcast.lane.b32.xlu0 %v906_v37, 256  ;;  %901 = vbcast.lane.b32.xlu1 %v899_v38, 256  ;;  %v2043_v44 = vmul.f32 %v1759_v39, %v1755_v53  ;;  %v735_v39 = vrot.slane %v2010_v24, %v1985_v5  ;;  %v2132_v24 = vadd.f32 %v1979_v0, %v2006_v22 }
 0x3ef   : > { %v2063_v53 = vrot.slane %v2043_v44, %v1985_v5  ;;  %v2070_v59 = vrot.slane %v2043_v44, %v856_v45  ;;  %v864_v3 = vrot.slane %v2043_v44, %v863_v56  ;;  %v871_v62 = vrot.slane %v2043_v44, %v870_v12 }
 0x3f0   : > { %v2123_v41 = vadd.f32 %v735_v39, %v1981_v2  ;;  %v759_v45 = vrot.slane %v678_v42, %v1985_v5  ;;  %v2140_v55 = vadd.f32 %v1979_v0, %v735_v39  ;;  %v727_v56 = vcombine.high %v723_v9, %v723_v9 }
 0x3f1   : > { %1162 = vbcast.lane.b32.xlu0 %v899_v38, 264  ;;  %1166 = vbcast.lane.b32.xlu1 %v906_v37, 264  ;;  %v934_v37 = vrot.slane %v2023_v32, %v877_v29  ;;  %v878_v38 = vrot.slane %v2043_v44, %v877_v29  ;;  %v850_v57 = vrot.slane %v2043_v44, %v849_v27  ;;  %v190_v32 = vld [vmem:[%s2392_s1 + $0x98] sm:$0xff]  ;;  %v1120_v12 = vmax.f32 %v2000_v19, 0.0 }
 0x3f2   : > { %v2128_v46 = vadd.f32 %v759_v45, %v1981_v2  ;;  %v2137_v54 = vadd.f32 %v1979_v0, %v759_v45  ;;  %v791_v22 = vrot.slane %v727_v56, %v1985_v5  ;;  %v892_v27 = vrot.slane %v2043_v44, %v891_v60 }
 0x3f3   : > { %v1123_v19 = vmax.f32 %v2058_v51, 0.0  ;;  %v1124_v45 = vmax.f32 %v2085_v6, 0.0  ;;  %v829_v56 = vmax.f32 %v2093_v13, 0.0 }
 0x3f4   : > { %v2158_v9 = vadd.f32 %v1979_v0, %v791_v22 }
 0x3f5   : > { %915 = vbcast.lane.b32.xlu1 %v913_v52, 256  ;;  %845 = vbcast.lane.b32.xlu0 %v2063_v53, 256 }
 0x3f9   : > { %1170 = vbcast.lane.b32.xlu1 %v913_v52, 264  ;;  %859 = vbcast.lane.b32.xlu0 %v2070_v59, 256  ;;  %v885_v52 = vrot.slane %v2043_v44, %v884_v43  ;;  %v1116_v43 = vmax.f32 %v2082_v4, 0.0 }
 0x3fd   : > { %922 = vbcast.lane.b32.xlu1 %v920_v1, 256  ;;  %866 = vbcast.lane.b32.xlu0 %v864_v3, 256 }
 0x401   : > { %1174 = vbcast.lane.b32.xlu1 %v920_v1, 264  ;;  %1142 = vbcast.lane.b32.xlu0 %v864_v3, 264  ;;  %v2148_v1 = vadd.f32 %v791_v22, %v1981_v2  ;;  %v2152_v3 = vadd.f32 %v1979_v0, %v2021_v28  ;;  %v187_v2 = vld [vmem:[%s2392_s1 + $0x80] sm:$0xff]  ;;  %v188_v0 = vld [vmem:[%s2392_s1 + $0x88] sm:$0xff]  ;;  %v189_v28 = vld [vmem:[%s2392_s1 + $0x90] sm:$0xff] }
 0x402   : > { %v1702_v5 = vpack.c.bf16 %v188_v0, %v187_v2  ;;  %v1706_v44 = vpack.c.bf16 %v190_v32, %v189_v28 }
 0x404   : > { %1703 = vmatprep.subr.bf16.mxu1 %v1702_v5 }
 0x405   : > { %929 = vbcast.lane.b32.xlu1 %v927_v16, 256  ;;  %873 = vbcast.lane.b32.xlu0 %v871_v62, 256 }
 0x406   : > { %1705 = vmatpush3.bf16.msra.mxu1 %v1702_v5 }
 0x407   : > { %1707 = vmatprep.subr.bf16.mxu1 %v1706_v44 }
 0x409   : > { %1178 = vbcast.lane.b32.xlu1 %v927_v16, 264  ;;  %1146 = vbcast.lane.b32.xlu0 %v871_v62, 264  ;;  %v1121_v16 = vmax.f32 %v2003_v20, 0.0  ;;  %v824_v62 = vmax.f32 %v2014_v25, 0.0 }
 0x40a   : > { %1709 = vmatpush3.bf16.msra.mxu1 %v1706_v44 }
 0x40d   : > { %936 = vbcast.lane.b32.xlu1 %v934_v37, 256  ;;  %880 = vbcast.lane.b32.xlu0 %v878_v38, 256 }
 0x411   : > { %1182 = vbcast.lane.b32.xlu1 %v934_v37, 264  ;;  %1150 = vbcast.lane.b32.xlu0 %v878_v38, 264  ;;  %v1115_v37 = vmax.f32 %v2055_v50, 0.0  ;;  %v836_v38 = vmax.f32 %v2076_v63, 0.0 }
 0x415   : > { %943 = vbcast.lane.b32.xlu1 %v941_v47, 256  ;;  %887 = vbcast.lane.b32.xlu0 %v885_v52, 256 }
 0x419   : > { %852 = vbcast.lane.b32.xlu1 %v850_v57, 256  ;;  %1154 = vbcast.lane.b32.xlu0 %v885_v52, 264 }
 0x41d   : > { %1130 = vbcast.lane.b32.xlu1 %v2063_v53, 264  ;;  %894 = vbcast.lane.b32.xlu0 %v892_v27, 256  ;;  %v833_v53 = vmax.f32 %v1990_v8, 0.0  ;;  %v827_v8 = vmax.f32 %v2049_v48, 0.0 }
 0x421   : > { %1134 = vbcast.lane.b32.xlu1 %v850_v57, 264  ;;  %1158 = vbcast.lane.b32.xlu0 %v892_v27, 264 }
 0x425   : > { %1138 = vbcast.lane.b32.xlu1 %v2070_v59, 264  ;;  %950 = vbcast.lane.b32.xlu0 %v948_v58, 256  ;;  %v832_v59 = vmax.f32 %v1996_v14, 0.0  ;;  %v835_v14 = vmax.f32 %v2052_v49, 0.0 }
 0x429   : > { %1186 = vbcast.lane.b32.xlu1 %v941_v47, 264 }
 0x42d   : > { %1190 = vbcast.lane.b32.xlu1 %v948_v58, 264 }
 0x45f   : > { %v909_v10 = vpop.permute.xlu0 %908  ;;  %v902_v11 = vpop.permute.xlu1 %901 }
 0x460   : > { %v961_v23 = vmul.f32 %v909_v10, %v833_v53  ;;  %v960_v29 = vmul.f32 %v902_v11, %v832_v59 }
 0x462   : > { %v1031_v20 = vsel %vm199_vm0, %v961_v23, 0.0  ;;  %v1024_v25 = vsel %vm199_vm0, %v960_v29, 0.0 }
 0x463   : > { %v1032_v39 = vrot.slane %v1031_v20, 4  ;;  %v1025_v33 = vrot.slane %v1024_v25, 4  ;;  %v1163_v42 = vpop.permute.xlu0 %1162  ;;  %v1167_v34 = vpop.permute.xlu1 %1166 }
 0x464   : > { %v1200_v47 = vmul.f32 %v1163_v42, %v1120_v12  ;;  %v1201_v52 = vmul.f32 %v1167_v34, %v1121_v16 }
 0x465   : > { %v1033_v22 = vadd.f32 %v1032_v39, %v1031_v20  ;;  %v1026_v60 = vadd.f32 %v1025_v33, %v1024_v25 }
 0x466   : > { %v1264_v2 = vsel %vm199_vm0, %v1200_v47, 0.0  ;;  %v1271_v0 = vsel %vm199_vm0, %v1201_v52, 0.0  ;;  %v839_v47 = vmax.f32 %v2148_v1, 0.0 }
 0x467   : > { %v1034_v32 = vrot.slane %v1033_v22, 2  ;;  %v1027_v44 = vrot.slane %v1026_v60, 2  ;;  %v1265_v53 = vrot.slane %v1264_v2, 4  ;;  %v1272_v59 = vrot.slane %v1271_v0, 4  ;;  %v846_v10 = vpop.permute.xlu0 %845  ;;  %v916_v11 = vpop.permute.xlu1 %915 }
 0x468   : > { %v952_v12 = vmul.f32 %v846_v10, %v824_v62  ;;  %v962_v16 = vmul.f32 %v916_v11, %v834_v21 }
 0x469   : > { %v1035_v20 = vadd.f32 %v1034_v32, %v1033_v22  ;;  %v1028_v25 = vadd.f32 %v1027_v44, %v1026_v60  ;;  %v1266_v39 = vadd.f32 %v1265_v53, %v1264_v2  ;;  %v1273_v33 = vadd.f32 %v1272_v59, %v1271_v0 }
 0x46a   : > { %v968_v42 = vsel %vm199_vm0, %v952_v12, 0.0  ;;  %v1038_v34 = vsel %vm199_vm0, %v962_v16, 0.0  ;;  %v1113_v59 = vmax.f32 %v2140_v55, 0.0 }
 0x46b   : > { %v1036_v28 = vrot.slane %v1035_v20, 1  ;;  %v1267_v62 = vrot.slane %v1266_v39, 2  ;;  %v1274_v21 = vrot.slane %v1273_v33, 2  ;;  %v860_v10 = vpop.permute.xlu0 %859  ;;  %v1171_v11 = vpop.permute.xlu1 %1170  ;;  %v969_v22 = vrot.slane %v968_v42, 4 }
 0x46c   : > { %v1039_v60 = vrot.slane %v1038_v34, 4  ;;  %v954_v2 = vmul.f32 %v860_v10, %v826_v30  ;;  %v1202_v0 = vmul.f32 %v1171_v11, %v1122_v31  ;;  %v1029_v32 = vrot.slane %v1028_v25, 1 }
 0x46d   : > { %v1268_v44 = vadd.f32 %v1267_v62, %v1266_v39  ;;  %v1275_v53 = vadd.f32 %v1274_v21, %v1273_v33  ;;  %v970_v12 = vadd.f32 %v969_v22, %v968_v42  ;;  %v1037_v30 = vadd.f32 %v1036_v28, %v1035_v20 }
 0x46e   : > { %v1040_v16 = vadd.f32 %v1039_v60, %v1038_v34  ;;  %v1278_v52 = vsel %vm199_vm0, %v1202_v0, 0.0  ;;  %v982_v58 = vsel %vm199_vm0, %v954_v2, 0.0  ;;  %v1030_v42 = vadd.f32 %v1029_v32, %v1028_v25 }
 0x46f   : > { %v1269_v23 = vrot.slane %v1268_v44, 1  ;;  %v1276_v5 = vrot.slane %v1275_v53, 1  ;;  %v1279_v29 = vrot.slane %v1278_v52, 4  ;;  %v867_v27 = vpop.permute.xlu0 %866  ;;  %v923_v57 = vpop.permute.xlu1 %922  ;;  %v983_v11 = vrot.slane %v982_v58, 4 }
 0x470   : > { %v1041_v31 = vrot.slane %v1040_v16, 2  ;;  %v955_v39 = vmul.f32 %v867_v27, %v827_v8  ;;  %v963_v33 = vmul.f32 %v923_v57, %v835_v14  ;;  %v971_v20 = vrot.slane %v970_v12, 2 }
 0x471   : > { %v1270_v34 = vadd.f32 %v1269_v23, %v1268_v44  ;;  %v1277_v62 = vadd.f32 %v1276_v5, %v1275_v53  ;;  %v1280_v21 = vadd.f32 %v1279_v29, %v1278_v52  ;;  %v1114_v14 = vmax.f32 %v2152_v3, 0.0 }
 0x472   : > { %v1042_v10 = vadd.f32 %v1041_v31, %v1040_v16  ;;  %v989_v22 = vsel %vm199_vm0, %v955_v39, 0.0  ;;  %v1045_v60 = vsel %vm199_vm0, %v963_v33, 0.0  ;;  %v1126_v57 = vmax.f32 %v2155_v7, 0.0 }
 0x473   : > { %v1328_v2 = vadd.f32 %v1270_v34, %v1030_v42  ;;  %v1329_v28 = vadd.f32 %v1277_v62, %v1037_v30  ;;  %v1281_v0 = vrot.slane %v1280_v21, 2  ;;  %v1143_v48 = vpop.permute.xlu0 %1142  ;;  %v1175_v8 = vpop.permute.xlu1 %1174  ;;  %v990_v27 = vrot.slane %v989_v22, 4 }
 0x474   : > { %v1046_v49 = vrot.slane %v1045_v60, 4  ;;  %v1043_v23 = vrot.slane %v1042_v10, 1  ;;  %v1195_v25 = vmul.f32 %v1143_v48, %v1115_v37  ;;  %v2224_v52 = vadd.f32 %v983_v11, %v982_v58 }
 0x475   : > { %v1370_v5 = vsel %vm1356_vm3, %v1329_v28, %v1328_v2  ;;  %v1282_v29 = vadd.f32 %v1281_v0, %v1280_v21  ;;  %v991_v32 = vadd.f32 %v990_v27, %v989_v22  ;;  %v1127_v53 = vmax.f32 %v2158_v9, 0.0 }
 0x476   : > { %v1047_v44 = vadd.f32 %v1046_v49, %v1045_v60  ;;  %v2227_v16 = vadd.f32 %v971_v20, %v970_v12  ;;  %v1229_v31 = vsel %vm199_vm0, %v1195_v25, 0.0  ;;  %v1203_v39 = vmul.f32 %v1175_v8, %v1123_v19 }
 0x477   : > { %v1283_v30 = vrot.slane %v1282_v29, 1  ;;  %v874_v33 = vpop.permute.xlu0 %873  ;;  %v930_v42 = vpop.permute.xlu1 %929  ;;  %v992_v34 = vrot.slane %v991_v32, 2  ;;  %v1230_v50 = vrot.slane %v1229_v31, 4  ;;  %v1044_v58 = vadd.f32 %v1043_v23, %v1042_v10 }
 0x478   : > { %v1048_v62 = vrot.slane %v1047_v44, 2  ;;  %v956_v37 = vmul.f32 %v874_v33, %v828_v26  ;;  %v1285_v11 = vsel %vm199_vm0, %v1203_v39, 0.0  ;;  %v964_v12 = vmul.f32 %v930_v42, %v836_v38 }
 0x479   : > { %v1284_v21 = vadd.f32 %v1283_v30, %v1282_v29  ;;  %v993_v22 = vadd.f32 %v992_v34, %v991_v32  ;;  %v1231_v2 = vadd.f32 %v1230_v50, %v1229_v31  ;;  %v1286_v51 = vrot.slane %v1285_v11, 4 }
 0x47a   : > { %v1049_v60 = vadd.f32 %v1048_v62, %v1047_v44  ;;  %v985_v19 = vrot.slane %v2224_v52, 2  ;;  %v996_v20 = vsel %vm199_vm0, %v956_v37, 0.0  ;;  %v1052_v0 = vsel %vm199_vm0, %v964_v12, 0.0 }
 0x47b   : > { %v1330_v28 = vadd.f32 %v1284_v21, %v1044_v58  ;;  %v1147_v61 = vpop.permute.xlu0 %1146  ;;  %v1179_v26 = vpop.permute.xlu1 %1178  ;;  %v994_v10 = vrot.slane %v993_v22, 1  ;;  %v1232_v8 = vrot.slane %v1231_v2, 2  ;;  %v1287_v27 = vadd.f32 %v1286_v51, %v1285_v11 }
 0x47c   : > { %v1050_v48 = vrot.slane %v1049_v60, 1  ;;  %v997_v38 = vrot.slane %v996_v20, 4  ;;  %v1053_v49 = vrot.slane %v1052_v0, 4  ;;  %v1196_v23 = vmul.f32 %v1147_v61, %v1116_v43 }
 0x47d   : > { %v1371_v63 = vsel %vm1358_vm4, %v1330_v28, %v1370_v5  ;;  %v995_v29 = vadd.f32 %v994_v10, %v993_v22  ;;  %v1233_v32 = vadd.f32 %v1232_v8, %v1231_v2  ;;  %v1288_v44 = vrot.slane %v1287_v27, 2 }
 0x47e   : > { %v1051_v25 = vadd.f32 %v1050_v48, %v1049_v60  ;;  %v998_v30 = vadd.f32 %v997_v38, %v996_v20  ;;  %v1054_v31 = vadd.f32 %v1053_v49, %v1052_v0  ;;  %v1236_v39 = vsel %vm199_vm0, %v1196_v23, 0.0 }
 0x47f   : > { %v1204_v33 = vmul.f32 %v1179_v26, %v1124_v45  ;;  %v881_v42 = vpop.permute.xlu0 %880  ;;  %v937_v34 = vpop.permute.xlu1 %936  ;;  %v1234_v5 = vrot.slane %v1233_v32, 1  ;;  %v1289_v62 = vadd.f32 %v1288_v44, %v1287_v27  ;;  %v1237_v50 = vrot.slane %v1236_v39, 4 }
 0x480   : > { %v957_v4 = vmul.f32 %v881_v42, %v829_v56  ;;  %v999_v43 = vrot.slane %v998_v30, 2  ;;  %v1055_v37 = vrot.slane %v1054_v31, 2  ;;  %v2397_v21 = vmax.f32 %v2096_v15, 0.0 }
 0x481   : > { %v1292_v58 = vsel %vm199_vm0, %v1204_v33, 0.0  ;;  %v1235_v12 = vadd.f32 %v1234_v5, %v1233_v32  ;;  %v1290_v22 = vrot.slane %v1289_v62, 1  ;;  %v1238_v60 = vadd.f32 %v1237_v50, %v1236_v39 }
 0x482   : > { %v965_v11 = vmul.f32 %v937_v34, %v2397_v21  ;;  %v1293_v6 = vrot.slane %v1292_v58, 4  ;;  %v1000_v45 = vadd.f32 %v999_v43, %v998_v30  ;;  %v1056_v2 = vadd.f32 %v1055_v37, %v1054_v31 }
 0x483   : > { %v1003_v51 = vsel %vm199_vm0, %v957_v4, 0.0  ;;  %v1151_v20 = vpop.permute.xlu0 %1150  ;;  %v1183_v13 = vpop.permute.xlu1 %1182  ;;  %v2253_v56 = vadd.f32 %v1235_v12, %v995_v29  ;;  %v1291_v0 = vadd.f32 %v1290_v22, %v1289_v62  ;;  %v1239_v61 = vrot.slane %v1238_v60, 2 }
 0x484   : > { %v1059_v28 = vsel %vm199_vm0, %v965_v11, 0.0  ;;  %v1294_v26 = vadd.f32 %v1293_v6, %v1292_v58  ;;  %v1001_v10 = vrot.slane %v1000_v45, 1  ;;  %v1057_v15 = vrot.slane %v1056_v2, 1 }
 0x485   : > { %v1004_v48 = vrot.slane %v1003_v51, 4  ;;  %v1060_v8 = vrot.slane %v1059_v28, 4  ;;  %v1331_v27 = vadd.f32 %v1291_v0, %v1051_v25  ;;  %v1240_v38 = vadd.f32 %v1239_v61, %v1238_v60 }
 0x486   : > { %v1295_v49 = vrot.slane %v1294_v26, 2  ;;  %v2398_v23 = vmax.f32 %v2101_v17, 0.0  ;;  %v1002_v44 = vadd.f32 %v1001_v10, %v1000_v45  ;;  %v1058_v30 = vadd.f32 %v1057_v15, %v1056_v2 }
 0x487   : > { %v1005_v31 = vadd.f32 %v1004_v48, %v1003_v51  ;;  %v1061_v39 = vadd.f32 %v1060_v8, %v1059_v28  ;;  %v888_v33 = vpop.permute.xlu0 %887  ;;  %v944_v29 = vpop.permute.xlu1 %943  ;;  %v2258_v42 = vsel %vm1360_vm5, %v1331_v27, %v1371_v63  ;;  %v1241_v34 = vrot.slane %v1240_v38, 1 }
 0x488   : > { %v1197_v32 = vmul.f32 %v1151_v20, %v2398_v23  ;;  %v1296_v5 = vadd.f32 %v1295_v49, %v1294_v26  ;;  %v2399_v43 = vmax.f32 %v2104_v18, 0.0  ;;  %v2400_v21 = vmax.f32 %v2110_v35, 0.0 }
 0x489   : > { %v1006_v50 = vrot.slane %v1005_v31, 2  ;;  %v1062_v25 = vrot.slane %v1061_v39, 2  ;;  %v1242_v37 = vadd.f32 %v1241_v34, %v1240_v38  ;;  %v2401_v12 = vmax.f32 %v2113_v36, 0.0 }
 0x48a   : > { %v1243_v62 = vsel %vm199_vm0, %v1197_v32, 0.0  ;;  %v1205_v17 = vmul.f32 %v1183_v13, %v2399_v43  ;;  %v1297_v58 = vrot.slane %v1296_v5, 1  ;;  %v958_v11 = vmul.f32 %v888_v33, %v2400_v21 }
 0x48b   : > { %v1244_v4 = vrot.slane %v1243_v62, 4  ;;  %v966_v22 = vmul.f32 %v944_v29, %v2401_v12  ;;  %v1007_v63 = vadd.f32 %v1006_v50, %v1005_v31  ;;  %v1063_v60 = vadd.f32 %v1062_v25, %v1061_v39  ;;  %v1155_v2 = vpop.permute.xlu0 %1154  ;;  %v853_v51 = vpop.permute.xlu1 %852 }
 0x48c   : > { %v1299_v45 = vsel %vm199_vm0, %v1205_v17, 0.0  ;;  %v2268_v28 = vadd.f32 %v1242_v37, %v1002_v44  ;;  %v1298_v20 = vadd.f32 %v1297_v58, %v1296_v5  ;;  %v1010_v13 = vsel %vm199_vm0, %v958_v11, 0.0 }
 0x48d   : > { %v1245_v6 = vadd.f32 %v1244_v4, %v1243_v62  ;;  %v1300_v18 = vrot.slane %v1299_v45, 4  ;;  %v973_v0 = vrot.slane %v2227_v16, 1  ;;  %v1008_v35 = vrot.slane %v1007_v63, 1 }
 0x48e   : > { %v1011_v26 = vrot.slane %v1010_v13, 4  ;;  %v2272_v36 = vadd.f32 %v1298_v20, %v1058_v30  ;;  %v1066_v15 = vsel %vm199_vm0, %v966_v22, 0.0  ;;  %v2402_v48 = vmax.f32 %v2120_v40, 0.0 }
 0x48f   : > { %v1246_v61 = vrot.slane %v1245_v6, 2  ;;  %v1301_v10 = vadd.f32 %v1300_v18, %v1299_v45  ;;  %v1009_v27 = vadd.f32 %v1008_v35, %v1007_v63  ;;  %v1064_v38 = vrot.slane %v1063_v60, 1  ;;  %v895_v32 = vpop.permute.xlu0 %894  ;;  %v1131_v44 = vpop.permute.xlu1 %1130 }
 0x490   : > { %v1198_v8 = vmul.f32 %v1155_v2, %v2402_v48  ;;  %v1012_v23 = vadd.f32 %v1011_v26, %v1010_v13  ;;  %v1067_v39 = vrot.slane %v1066_v15, 4  ;;  %v2403_v29 = vmax.f32 %v2123_v41, 0.0 }
 0x491   : > { %v1247_v49 = vadd.f32 %v1246_v61, %v1245_v6  ;;  %v1302_v31 = vrot.slane %v1301_v10, 2  ;;  %v2404_v50 = vmax.f32 %v2128_v46, 0.0  ;;  %v2405_v17 = vmax.f32 %v2132_v24, 0.0 }
 0x492   : > { %v1250_v33 = vsel %vm199_vm0, %v1198_v8, 0.0  ;;  %v953_v30 = vmul.f32 %v853_v51, %v2403_v29  ;;  %v1013_v5 = vrot.slane %v1012_v23, 2  ;;  %v1068_v4 = vadd.f32 %v1067_v39, %v1066_v15 }
 0x493   : > { %v1248_v34 = vrot.slane %v1247_v49, 1  ;;  %v1251_v62 = vrot.slane %v1250_v33, 4  ;;  %v959_v40 = vmul.f32 %v895_v32, %v2404_v50  ;;  %v1303_v25 = vadd.f32 %v1302_v31, %v1301_v10  ;;  %v1159_v22 = vpop.permute.xlu0 %1158  ;;  %v1135_v41 = vpop.permute.xlu1 %1134 }
 0x494   : > { %v975_v43 = vsel %vm199_vm0, %v953_v30, 0.0  ;;  %v1192_v37 = vmul.f32 %v1131_v44, %v2405_v17  ;;  %v1014_v21 = vadd.f32 %v1013_v5, %v1012_v23  ;;  %v2288_v63 = vadd.f32 %v985_v19, %v2224_v52 }
 0x495   : > { %v1249_v58 = vadd.f32 %v1248_v34, %v1247_v49  ;;  %v1252_v11 = vadd.f32 %v1251_v62, %v1250_v33  ;;  %v976_v12 = vrot.slane %v975_v43, 4  ;;  %v1304_v46 = vrot.slane %v1303_v25, 1 }
 0x496   : > { %v1017_v6 = vsel %vm199_vm0, %v959_v40, 0.0  ;;  %v1208_v45 = vsel %vm199_vm0, %v1192_v37, 0.0  ;;  %v1065_v2 = vadd.f32 %v1064_v38, %v1063_v60  ;;  %v1069_v13 = vrot.slane %v1068_v4, 2 }
 0x497   : > { %v2292_v24 = vadd.f32 %v1249_v58, %v1009_v27  ;;  %v1253_v51 = vrot.slane %v1252_v11, 2  ;;  %v977_v20 = vadd.f32 %v976_v12, %v975_v43  ;;  %v1305_v18 = vadd.f32 %v1304_v46, %v1303_v25  ;;  %v1139_v48 = vpop.permute.xlu1 %1138  ;;  %v951_v27 = vpop.permute.xlu0 %950 }
 0x498   : > { %v1018_v35 = vrot.slane %v1017_v6, 4  ;;  %v1209_v61 = vrot.slane %v1208_v45, 4  ;;  %v1015_v26 = vrot.slane %v1014_v21, 1  ;;  %v2406_v52 = vmax.f32 %v2137_v54, 0.0 }
 0x499   : > { %v1254_v10 = vadd.f32 %v1253_v51, %v1252_v11  ;;  %v978_v15 = vrot.slane %v977_v20, 2  ;;  %v974_v8 = vadd.f32 %v973_v0, %v2227_v16  ;;  %v1333_v49 = vadd.f32 %v1305_v18, %v1065_v2 }
 0x49a   : > { %v1199_v19 = vmul.f32 %v1159_v22, %v2406_v52  ;;  %v1019_v23 = vadd.f32 %v1018_v35, %v1017_v6  ;;  %v1210_v60 = vadd.f32 %v1209_v61, %v1208_v45  ;;  %v1193_v31 = vmul.f32 %v1135_v41, %v1113_v59 }
 0x49b   : > { %v1255_v38 = vrot.slane %v1254_v10, 1  ;;  %v979_v32 = vadd.f32 %v978_v15, %v977_v20  ;;  %v2300_v39 = vadd.f32 %v1069_v13, %v1068_v4  ;;  %v1016_v30 = vadd.f32 %v1015_v26, %v1014_v21  ;;  %v1187_v5 = vpop.permute.xlu1 %1186 }
 0x49c   : > { %v1257_v44 = vsel %vm199_vm0, %v1199_v19, 0.0  ;;  %v1020_v33 = vrot.slane %v1019_v23, 2  ;;  %v1211_v54 = vrot.slane %v1210_v60, 2  ;;  %v1215_v16 = vsel %vm199_vm0, %v1193_v31, 0.0 }
 0x49d   : > { %v1258_v29 = vrot.slane %v1257_v44, 4  ;;  %v1256_v34 = vadd.f32 %v1255_v38, %v1254_v10  ;;  %v967_v0 = vmul.f32 %v951_v27, %v839_v47  ;;  %v1216_v25 = vrot.slane %v1215_v16, 4 }
 0x49e   : > { %v1021_v62 = vadd.f32 %v1020_v33, %v1019_v23  ;;  %v1212_v50 = vadd.f32 %v1211_v54, %v1210_v60  ;;  %v980_v55 = vrot.slane %v979_v32, 1  ;;  %v1194_v4 = vmul.f32 %v1139_v48, %v1114_v14 }
 0x49f   : > { %v1259_v40 = vadd.f32 %v1258_v29, %v1257_v44  ;;  %v2305_v43 = vadd.f32 %v1256_v34, %v1016_v30  ;;  %v1073_v59 = vsel %vm199_vm0, %v967_v0, 0.0  ;;  %v1217_v21 = vadd.f32 %v1216_v25, %v1215_v16  ;;  %v1191_v12 = vpop.permute.xlu1 %1190 }
 0x4a0   : > { %v1022_v17 = vrot.slane %v1021_v62, 1  ;;  %v1213_v37 = vrot.slane %v1212_v50, 1  ;;  %v1074_v11 = vrot.slane %v1073_v59, 4  ;;  %v1222_v1 = vsel %vm199_vm0, %v1194_v4, 0.0 }
 0x4a1   : > { %v1260_v58 = vrot.slane %v1259_v40, 2  ;;  %v1206_v47 = vmul.f32 %v1187_v5, %v1126_v57  ;;  %v1373_v22 = vsel %vm1362_vm6, %v2272_v36, %v2258_v42  ;;  %v1218_v3 = vrot.slane %v1217_v21, 2 }
 0x4a2   : > { %v1023_v41 = vadd.f32 %v1022_v17, %v1021_v62  ;;  %v1214_v46 = vadd.f32 %v1213_v37, %v1212_v50  ;;  %v1075_v14 = vadd.f32 %v1074_v11, %v1073_v59  ;;  %v1223_v45 = vrot.slane %v1222_v1, 4 }
 0x4a3   : > { %v1261_v6 = vadd.f32 %v1260_v58, %v1259_v40  ;;  %v1306_v2 = vsel %vm199_vm0, %v1206_v47, 0.0  ;;  %v1207_v51 = vmul.f32 %v1191_v12, %v1127_v53  ;;  %v1219_v7 = vadd.f32 %v1218_v3, %v1217_v21 }
 0x4a4   : > { %v1320_v20 = vadd.f32 %v1214_v46, %v974_v8  ;;  %v1307_v57 = vrot.slane %v1306_v2, 4  ;;  %v1076_v13 = vrot.slane %v1075_v14, 2  ;;  %v1224_v35 = vadd.f32 %v1223_v45, %v1222_v1 }
 0x4a5   : > { %v1262_v18 = vrot.slane %v1261_v6, 1  ;;  %v1313_v61 = vsel %vm199_vm0, %v1207_v51, 0.0  ;;  %v1374_v42 = vsel %vm1364_vm7, %v1333_v49, %v1373_v22  ;;  %v1220_v26 = vrot.slane %v1219_v7, 1 }
 0x4a6   : > { %v1308_v10 = vadd.f32 %v1307_v57, %v1306_v2  ;;  %v1314_v15 = vrot.slane %v1313_v61, 4  ;;  %v981_v52 = vadd.f32 %v980_v55, %v979_v32  ;;  %v1077_v19 = vadd.f32 %v1076_v13, %v1075_v14 }
 0x4a7   : > { %v1263_v36 = vadd.f32 %v1262_v18, %v1261_v6  ;;  %v1225_v48 = vrot.slane %v1224_v35, 2  ;;  %v1221_v23 = vadd.f32 %v1220_v26, %v1219_v7  ;;  %v987_v60 = vrot.slane %v2288_v63, 1 }
 0x4a8   : > { %v1309_v9 = vrot.slane %v1308_v10, 2  ;;  %v1315_v53 = vadd.f32 %v1314_v15, %v1313_v61  ;;  %v1071_v38 = vrot.slane %v2300_v39, 1  ;;  %v1078_v29 = vrot.slane %v1077_v19, 1 }
 0x4a9   : > { %v1327_v8 = vadd.f32 %v1263_v36, %v1023_v41  ;;  %v1226_v27 = vadd.f32 %v1225_v48, %v1224_v35  ;;  %v1321_v44 = vadd.f32 %v1221_v23, %v981_v52  ;;  %v988_v34 = vadd.f32 %v987_v60, %v2288_v63 }
 0x4aa   : > { %v1310_v31 = vadd.f32 %v1309_v9, %v1308_v10  ;;  %v1316_v33 = vrot.slane %v1315_v53, 2  ;;  %v1072_v0 = vadd.f32 %v1071_v38, %v2300_v39  ;;  %v1079_v40 = vadd.f32 %v1078_v29, %v1077_v19 }
 0x4ab   : > { %v1227_v49 = vrot.slane %v1226_v27, 1  ;;  %v1357_v54 = vsel %vm1356_vm3, %v1321_v44, %v1320_v20 }
 0x4ac   : > { %v1311_v30 = vrot.slane %v1310_v31, 1  ;;  %v1317_v32 = vadd.f32 %v1316_v33, %v1315_v53 }
 0x4ad   : > { %v1228_v16 = vadd.f32 %v1227_v49, %v1226_v27 }
 0x4ae   : > { %v1312_v5 = vadd.f32 %v1311_v30, %v1310_v31  ;;  %v1318_v62 = vrot.slane %v1317_v32, 1 }
 0x4af   : > { %v1322_v50 = vadd.f32 %v1228_v16, %v988_v34 }
 0x4b0   : > { %v1334_v25 = vadd.f32 %v1312_v5, %v1072_v0  ;;  %v1319_v55 = vadd.f32 %v1318_v62, %v1317_v32 }
 0x4b1   : > { %v1359_v59 = vsel %vm1358_vm4, %v1322_v50, %v1357_v54 }
 0x4b2   : > { %v1335_v4 = vadd.f32 %v1319_v55, %v1079_v40  ;;  %v1361_v17 = vsel %vm1360_vm5, %v2253_v56, %v1359_v59  ;;  %v1375_v37 = vsel %vm1366_vm8, %v1334_v25, %v1374_v42  ;;  %v1558_v56 = vld [vmem:[%s2393_s2 + $0x3] ss:$0 sm:$0xff] }
 0x4b3   : > { %v1363_v63 = vsel %vm1362_vm6, %v2268_v28, %v1361_v17 }
 0x4b4   : > { %v1365_v39 = vsel %vm1364_vm7, %v2292_v24, %v1363_v63  ;;  %v1376_v58 = vsel %vm1368_vm9, %v1335_v4, %v1375_v37 }
 0x4b5   : > { %v1367_v21 = vsel %vm1366_vm8, %v2305_v43, %v1365_v39 }
 0x4b6   : > { %v1369_v11 = vsel %vm1368_vm9, %v1327_v8, %v1367_v21 }
 0x4b7   : > { %1661 = vmatprep.mubr.msk.f32.mxu1 %vm199_vm0, %v1369_v11 }
 0x4b8   : > { %1662 = vmatmul.mubr.msk.f32.vlgmr.msra.gmra.mrb[4].mxu1 %vm199_vm0, %v1376_v58 }
 0x58b   : > { %v1663_v1 = vpop.f32.mrb[4].mxu1 }
 0x58c   : > { %v1453_v28 = vadd.f32 %v1663_v1, %v1558_v56  ;;  %v1447_v24 = vpop.f32.mrb[5].mxu1 }
 0x58d   : > { %v1448_v47 = vadd.f32 %v1558_v56, %v1447_v24 }
 0x58e   : > { %v1457_v43 = vmul.f32 0.0625, %v1453_v28 }
 0x58f   : > { %v1456_v12 = vmul.f32 0.0625, %v1448_v47 }
 0x590   : > { %1459 = vst.msk [vmem:[%s163_s25 + $0x8] sm:$0xff] %vm199_vm0, %v1457_v43 }
 0x591   : > { %1458 = vst.msk [vmem:[%s163_s25] sm:$0xff] %vm199_vm0, %v1456_v12 }
 0x592   : > { %1773 = shalt.err (!%p1770_p3)
}
 0x593   : > { %s1774_s8 = scalar_lea.hbm %s2346_s30, 256  ;;  %s1778_s11 = scalar_lea.hbm %s2394_s3, 1024 }
 0x594   : > { %p1775_p4 = scmp.ne.s32.totalorder %s2346_s30, %s1774_s8  ;;  %p1779_p9 = scmp.lt.u32.totalorder %s2346_s30, %s2394_s3 }
 0x595   : > { %p1780_p10 = scmp.lt.u32.totalorder %s1778_s11, %s1774_s8  ;;  %p1782_p12 = scmp.lt.u32.totalorder %s1774_s8, %s2346_s30 }
 0x596   : > { %p1776_p7 = pnand %p1775_p4, %p1886_p5 }
 0x597   : > { %p1781_p11 = por %p1780_p10, %p1779_p9 }
 0x598   : > { %p1777_p8 = pneg %p1776_p7 }
 0x599   : > { %p1783_p13 = por %p1782_p12, %p1781_p11 }
 0x59b   : > { %p1784_p0 = pnand %p1783_p13, %p1777_p8 }
 0x59d   : > { %1787 = shalt.err (!%p1784_p0)
}
 0x59e   : > { %s1826_s20 = smov 128   ;;  %s1827_s24 = smov 8  }
 0x59f   : > { %1710 = dma.vmem_to_hbm [thread:$0]  (%p1886_p5), %s2341_s26, 256, %s2346_s30, %s2350_s16, %s1826_s20, %s1826_s20, %s1827_s24  }
 0x5a0 PF: > { %p1716_p1 = scmp.ge.s32.totalorder %s1822_s15, 2  ;;  %s1489_s25 = sand.u32 1, %s1810_s12  }
 0x5a1   : > { %s1490_s27 = scalar_lea.sflag [#allocation3], %s1489_s25 }
 0x5a2   : > { %p1713_p2 = pnand %p1716_p1, %p1890_p6 }
 0x5a4   : > { %1805 = dma.done.wait (!%p1713_p2), %s1490_s27, 256  }
 0x5a5   : > { %1807 = vsyncadd (!%p1713_p2), %s1490_s27, 4294967040  ;;  %p13_p3 = scmp.ge.s32.totalorder %s1873_s18, 6   ;;  %s2407_s12 = smov %s1814_s13 }
 0x5a6   : > { %s2408_s13 = smov %s1818_s14  ;;  %s2409_s14 = smov %s1884_s21 }
 0x5a7   : > { %s2410_s15 = smov %s1873_s18  ;;  %15 = sbr.rel (!%p13_p3) target bundleno = 3 (0x3), region = 67 }
 0x5ae   :  { %1495 = vsyncpa [#allocation3], 1 }
 0x5af   :  { %1497 = vsyncpa [#allocation3 + $0x1], 1 }

</bundles_post_ra>
